<compile_context>
chip_gen: v7x
topology: tpu7x:2x2x1
jax: 0.10.0
libtpu: 0.0.40
codegen_flags: <defaults>
</compile_context>

<pallas_src>
import jax
import jax.numpy as jnp
from jax.experimental import pallas as pl
from jax.experimental.pallas import tpu as pltpu


def _round_up(x: int, m: int) -> int:
    return ((x + m - 1) // m) * m


def _mse_with_logits_kernel(logits_ref, targets_ref, mask_ref, out_ref):
    # out_ref: (1, 8, lanes) partial-sum accumulator, resident across the
    # "arbitrary" (reduction) grid axis 1.
    j = pl.program_id(1)

    x = logits_ref[...].astype(jnp.float32)
    t = targets_ref[...].astype(jnp.float32)
    m = mask_ref[...].astype(jnp.float32)

    inputs = jnp.clip(jax.nn.sigmoid(x), 0.0001, 1.0 - 0.0001)
    # Keep exact == semantics (mask may legitimately carry values other than
    # 0/1, and the wrapper's padding relies on mask == -1 contributing zero).
    pos_id = (m == 1.0).astype(jnp.float32)
    neg_id = (m == 0.0).astype(jnp.float32)
    diff = inputs - t
    loss = 5.0 * (pos_id * (diff * diff)) + neg_id * (inputs * inputs)

    rows, lanes = loss.shape
    # (rows, lanes) -> (rows//8, 8, lanes) is a pure regrouping of (8,128)
    # vreg tiles; the sum over axis 0 is element-wise VPU adds (no XLU).
    partial = loss.reshape(rows // 8, 8, lanes).sum(axis=0)

    @pl.when(j == 0)
    def _():
        out_ref[...] = jnp.zeros_like(out_ref)

    out_ref[...] += partial[None, :, :]


def mse_with_logits_loss(logits, targets, mask, *, reduction="mean",
                         block_rows=512, lanes=512, num_splits=2):
    """Pallas implementation of MSEWithLogitsLoss.forward (reduction='mean')."""
    assert reduction == "mean", "only reduction='mean' implemented in kernel"
    assert lanes % 128 == 0, "lanes must be a multiple of 128"
    batch_size = logits.shape[0]
    total = logits.size

    lf = logits.reshape(-1)
    tf = targets.reshape(-1)
    mf = mask.reshape(-1).astype(jnp.float32)

    # Lane/sublane-dense layout: pad the flat arrays so they reshape to
    # (rows_padded, lanes) with rows_padded a multiple of block_rows*num_splits.
    rows = -(-total // lanes)
    block_rows = max(8, min(_round_up(block_rows, 8), _round_up(rows, 8)))
    rows_padded = _round_up(rows, block_rows * num_splits)
    pad = rows_padded * lanes - total
    if pad:
        lf = jnp.pad(lf, (0, pad))                            # sigmoid(0) is fine,
        tf = jnp.pad(tf, (0, pad))                            # because...
        mf = jnp.pad(mf, (0, pad), constant_values=-1.0)      # mask=-1 => zero loss

    L = lf.reshape(rows_padded, lanes)
    T = tf.reshape(rows_padded, lanes)
    M = mf.reshape(rows_padded, lanes)

    steps = rows_padded // (block_rows * num_splits)
    grid = (num_splits, steps)   # (parallel, arbitrary/reduction)

    def in_map(c, j):
        return (c * steps + j, 0)

    in_spec = pl.BlockSpec((block_rows, lanes), in_map)

    partials = pl.pallas_call(
        _mse_with_logits_kernel,
        out_shape=jax.ShapeDtypeStruct((num_splits, 8, lanes), jnp.float32),
        grid_spec=pltpu.PrefetchScalarGridSpec(
            num_scalar_prefetch=0,
            grid=grid,
            in_specs=[in_spec, in_spec, in_spec],
            out_specs=pl.BlockSpec((1, 8, lanes), lambda c, j: (c, 0, 0)),
        ),
        compiler_params=pltpu.CompilerParams(
            dimension_semantics=("parallel", "arbitrary")),
    )(L, T, M)

    # Single tiny cross-lane reduction + divide, outside the hot loop.
    return jnp.sum(partials) / jnp.float32(batch_size)


def _reference(logits, targets, mask):
    inputs = jnp.clip(jax.nn.sigmoid(logits), 0.0001, 1.0 - 0.0001)
    pos_id = (mask == 1.0).astype(jnp.float32)
    neg_id = (mask == 0.0).astype(jnp.float32)
    loss = 5.0 * pos_id * (inputs - targets) ** 2 + neg_id * inputs ** 2
    return jnp.sum(loss) / logits.shape[0]


if __name__ == "__main__":
    key = jax.random.PRNGKey(0)
    k1, k2, k3 = jax.random.split(key, 3)

    B, N = 2, 256  # e.g. conf_pred[:, :, 0] for a 16x16 detection grid
    logits = jax.random.normal(k1, (B, N), dtype=jnp.float32)
    targets = jax.random.uniform(k2, (B, N), dtype=jnp.float32)       # conf_gt
    mask = jax.random.bernoulli(k3, 0.3, (B, N)).astype(jnp.float32)  # obj_gt in {0,1}

    out = mse_with_logits_loss(logits, targets, mask)
    out = jax.block_until_ready(out)

    ref = _reference(logits, targets, mask)
    assert jnp.allclose(out, ref, rtol=1e-5, atol=1e-5), (out, ref)

    print("KERNEL_OK")
</pallas_src>

<mosaic_0001>
module attributes {stable_mosaic.version = 11 : i64} {
  func.func @_mse_with_logits_kernel(%arg0: i32, %arg1: i32, %arg2: memref<8x512xf32, #tpu.memory_space<vmem>>, %arg3: memref<8x512xf32, #tpu.memory_space<vmem>>, %arg4: memref<8x512xf32, #tpu.memory_space<vmem>>, %arg5: memref<1x8x512xf32, #tpu.memory_space<vmem>>) attributes {dimension_semantics = [#tpu.dimension_semantics<parallel>, #tpu.dimension_semantics<arbitrary>], iteration_bounds = array<i64: 2, 1>, scalar_prefetch = 0 : i64, scratch_operands = 0 : i64, tpu.core_type = #tpu.core_type<tc>, window_params = [{transform_indices = @transform_0, window_bounds = array<i64: 8, 512>}, {transform_indices = @transform_1, window_bounds = array<i64: 8, 512>}, {transform_indices = @transform_2, window_bounds = array<i64: 8, 512>}, {transform_indices = @transform_3, window_bounds = array<i64: 1, 8, 512>}]} {
    %c0 = arith.constant 0 : index
    %c0_0 = arith.constant 0 : index
    %0 = vector.load %arg2[%c0, %c0_0] : memref<8x512xf32, #tpu.memory_space<vmem>>, vector<8x512xf32>
    %c0_1 = arith.constant 0 : index
    %c0_2 = arith.constant 0 : index
    %1 = vector.load %arg3[%c0_1, %c0_2] : memref<8x512xf32, #tpu.memory_space<vmem>>, vector<8x512xf32>
    %c0_3 = arith.constant 0 : index
    %c0_4 = arith.constant 0 : index
    %2 = vector.load %arg4[%c0_3, %c0_4] : memref<8x512xf32, #tpu.memory_space<vmem>>, vector<8x512xf32>
    %3 = arith.negf %0 : vector<8x512xf32>
    %4 = math.exp %3 : vector<8x512xf32>
    %cst = arith.constant 1.000000e+00 : f32
    %5 = vector.broadcast %cst : f32 to vector<8x512xf32>
    %6 = arith.addf %5, %4 : vector<8x512xf32>
    %7 = arith.divf %5, %6 : vector<8x512xf32>
    %cst_5 = arith.constant 9.99999974E-5 : f32
    %cst_6 = arith.constant 0.999899983 : f32
    %8 = vector.broadcast %cst_5 : f32 to vector<8x512xf32>
    %9 = arith.maximumf %8, %7 : vector<8x512xf32>
    %10 = vector.broadcast %cst_6 : f32 to vector<8x512xf32>
    %11 = arith.minimumf %10, %9 : vector<8x512xf32>
    %cst_7 = arith.constant 1.000000e+00 : f32
    %12 = vector.broadcast %cst_7 : f32 to vector<8x512xf32>
    %13 = arith.cmpf oeq, %2, %12 : vector<8x512xf32>
    %14 = arith.extui %13 : vector<8x512xi1> to vector<8x512xi32>
    %15 = arith.sitofp %14 : vector<8x512xi32> to vector<8x512xf32>
    %cst_8 = arith.constant 0.000000e+00 : f32
    %16 = vector.broadcast %cst_8 : f32 to vector<8x512xf32>
    %17 = arith.cmpf oeq, %2, %16 : vector<8x512xf32>
    %18 = arith.extui %17 : vector<8x512xi1> to vector<8x512xi32>
    %19 = arith.sitofp %18 : vector<8x512xi32> to vector<8x512xf32>
    %20 = arith.subf %11, %1 : vector<8x512xf32>
    %21 = arith.mulf %20, %20 : vector<8x512xf32>
    %22 = arith.mulf %15, %21 : vector<8x512xf32>
    %cst_9 = arith.constant 5.000000e+00 : f32
    %23 = vector.broadcast %cst_9 : f32 to vector<8x512xf32>
    %24 = arith.mulf %23, %22 : vector<8x512xf32>
    %25 = arith.mulf %11, %11 : vector<8x512xf32>
    %26 = arith.mulf %19, %25 : vector<8x512xf32>
    %27 = arith.addf %24, %26 : vector<8x512xf32>
    %28 = vector.shape_cast %27 : vector<8x512xf32> to vector<1x8x512xf32>
    %cst_10 = arith.constant dense<0.000000e+00> : vector<8x512xf32>
    %29 = vector.multi_reduction <add>, %28, %cst_10 [0] : vector<1x8x512xf32> to vector<8x512xf32>
    %c0_i32 = arith.constant 0 : i32
    %30 = arith.cmpi eq, %arg1, %c0_i32 : i32
    %31 = arith.extui %30 : i1 to i32
    %c0_i32_11 = arith.constant 0 : i32
    %32 = arith.cmpi ne, %31, %c0_i32_11 : i32
    scf.if %32 {
      %cst_18 = arith.constant 0.000000e+00 : f32
      %37 = vector.broadcast %cst_18 : f32 to vector<1x8x512xf32>
      %c0_19 = arith.constant 0 : index
      %c0_20 = arith.constant 0 : index
      %c0_21 = arith.constant 0 : index
      %38 = vector.load %arg5[%c0_19, %c0_20, %c0_21] : memref<1x8x512xf32, #tpu.memory_space<vmem>>, vector<1x8x512xf32>
      tpu.vector_store %arg5[%c0_19, %c0_20, %c0_21], %37 {strides = array<i32>} : memref<1x8x512xf32, #tpu.memory_space<vmem>>, vector<1x8x512xf32>,
    } else {
    }
    %c0_12 = arith.constant 0 : index
    %c0_13 = arith.constant 0 : index
    %c0_14 = arith.constant 0 : index
    %33 = vector.load %arg5[%c0_12, %c0_13, %c0_14] : memref<1x8x512xf32, #tpu.memory_space<vmem>>, vector<1x8x512xf32>
    %34 = vector.shape_cast %29 : vector<8x512xf32> to vector<1x8x512xf32>
    %35 = arith.addf %33, %34 : vector<1x8x512xf32>
    %c0_15 = arith.constant 0 : index
    %c0_16 = arith.constant 0 : index
    %c0_17 = arith.constant 0 : index
    %36 = vector.load %arg5[%c0_15, %c0_16, %c0_17] : memref<1x8x512xf32, #tpu.memory_space<vmem>>, vector<1x8x512xf32>
    tpu.vector_store %arg5[%c0_15, %c0_16, %c0_17], %35 {strides = array<i32>} : memref<1x8x512xf32, #tpu.memory_space<vmem>>, vector<1x8x512xf32>,
    return
  }
  func.func @transform_0(%arg0: i32, %arg1: i32) -> (i32, i32) {
    %c1_i32 = arith.constant 1 : i32
    %0 = arith.muli %arg0, %c1_i32 : i32
    %1 = arith.addi %0, %arg1 : i32
    %c0_i32 = arith.constant 0 : i32
    %c0_i32_0 = arith.constant 0 : i32
    return %1, %c0_i32 : i32, i32
  }
  func.func @transform_1(%arg0: i32, %arg1: i32) -> (i32, i32) {
    %c1_i32 = arith.constant 1 : i32
    %0 = arith.muli %arg0, %c1_i32 : i32
    %1 = arith.addi %0, %arg1 : i32
    %c0_i32 = arith.constant 0 : i32
    %c0_i32_0 = arith.constant 0 : i32
    return %1, %c0_i32 : i32, i32
  }
  func.func @transform_2(%arg0: i32, %arg1: i32) -> (i32, i32) {
    %c1_i32 = arith.constant 1 : i32
    %0 = arith.muli %arg0, %c1_i32 : i32
    %1 = arith.addi %0, %arg1 : i32
    %c0_i32 = arith.constant 0 : i32
    %c0_i32_0 = arith.constant 0 : i32
    return %1, %c0_i32 : i32, i32
  }
  func.func @transform_3(%arg0: i32, %arg1: i32) -> (i32, i32, i32) {
    %c0_i32 = arith.constant 0 : i32
    %c0_i32_0 = arith.constant 0 : i32
    %c0_i32_1 = arith.constant 0 : i32
    return %arg0, %c0_i32, %c0_i32_0 : i32, i32, i32
  }
}

</mosaic_0001>

<bundles_post_ra>
// kernel: tpu_custom_call.1
= control target key start
LH: loop header
LB: loop body
LE: loop exit
PB: predicated region body
PF: predicated region fallthrough
CT: control target
= control target key end

     0   :  { %s1144_s0 = inlined_call_operand.hbm [shape: f32[16,512], index: 0, kind: input, shape index: {}]   ;;  %s1145_s1 = inlined_call_operand.hbm [shape: f32[16,512], index: 1, kind: input, shape index: {}]   ;;  %s1146_s2 = inlined_call_operand.hbm [shape: f32[16,512], index: 2, kind: input, shape index: {}]   ;;  %s1147_s3 = inlined_call_operand.hbm [shape: f32[2,8,512], index: 3, kind: output, shape index: {}]  }
   0x1   :  { %1153 = sst [smem:[#allocation15_spill]] %s1145_s1 }
   0x2   :  { %8 = vsyncpa [#allocation3], 0 }
   0x3   :  { %10 = vsyncpa [#allocation3 + $0x1], 0 }
   0x4   :  { %11 = vsyncpa [#allocation6], 0 }
   0x5   :  { %13 = vsyncpa [#allocation6 + $0x1], 0 }
   0x6   :  { %14 = vsyncpa [#allocation4], 0 }
   0x7   :  { %16 = vsyncpa [#allocation4 + $0x1], 0  ;;  %s874_s12 = smov 0   ;;  %s876_s13 = smov 0  }
   0x8   :  { %s878_s14 = smov 0   ;;  %s880_s15 = smov 0  }
   0x9   :  { %s882_s16 = smov 0   ;;  %s884_s17 = smov 0  }
   0xa LB: > { %1154 = sst [smem:[#allocation12_spill]] %s843_s16  ;;  %s905_s18 = sadd.s32 4294967295, %s847_s17   ;;  %s847_s17 = sphi %s884_s17, %s22_s17   ;;  %s843_s16 = sphi %s882_s16, %s1175_s16   ;;  %s839_s15 = sphi %s880_s15, %s1174_s15   ;;  %s835_s14 = sphi %s878_s14, %s1178_s14   ;;  %s831_s13 = sphi %s876_s13, %s1177_s13   ;;  %s827_s12 = sphi %s874_s12, %s1176_s12  }
   0xb   : > { %s544_s19 = sadd.s32 4294967294, %s847_s17   ;;  %s34_s20 = sadd.s32 1, %s843_s16 }
   0xc   : > { %s43_s21 = sadd.s32 1, %s835_s14  ;;  %p36_p0 = scmp.ge.s32.totalorder %s34_s20, 2 }
   0xd   : > { %p50_p1 = scmp.ne.s32.totalorder %s835_s14, %s831_s13  ;;  %p51_p2 = scmp.eq.s32.totalorder %s847_s17, 0 }
   0xe   : > { %p56_p3 = scmp.ne.s32.totalorder %s831_s13, %s827_s12  ;;  %s1180_s20 = smov (%p36_p0, %s34_s20), 0 }
   0xf   : > { %1155 = sst [smem:[#allocation13_spill]] %s1180_s20  ;;  %p917_p4 = por %p51_p2, %p50_p1 }
  0x10   : > { %p57_p5 = scmp.eq.s32.totalorder %s905_s18, 0  ;;  %s40_s23 = ssub.s32 %s843_s16, %s1180_s20 }
  0x11   : > { %p136_p6 = scmp.eq.s32.totalorder %s905_s18, 1  ;;  %p41_p7 = scmp.eq.s32.totalorder %s40_s23, 0 }
  0x12   : > { %p925_p8 = por %p57_p5, %p56_p3  ;;  %p142_p10 = scmp.eq.s32.totalorder %s544_s19, 1 }
  0x13   : > { %p929_p9 = por %p136_p6, %p50_p1  ;;  %p604_p13 = scmp.lt.s32.totalorder %s847_s17, 2 }
  0x14   : > { %s1157_s24 = scalar_select %p925_p8, 1, 0 }
  0x15   : > { %s1158_s25 = scalar_select %p929_p9, 1, 0 }
  0x16   : > { %s934_s26 = scalar_select %p41_p7, %s835_s14, %s43_s21  }
  0x17   : > { %p936_p11 = por %p142_p10, %p56_p3  ;;  %s162_s28 = sand.u32 1, %s835_s14  }
  0x18   : > { %1159 = sst [smem:[#allocation14_spill]] %s934_s26  ;;  %s945_s29 = sshll.u32 %s162_s28, 5 }
  0x19   : > { %s1160_s27 = scalar_select %p936_p11, 1, 0 }
  0x1a   : > { %s948_s30 = sshll.u32 %s843_s16, 9  ;;  %p952_p0 = pnand %p604_p13, %p917_p4 }
  0x1b   : > { %s182_s5 = sand.u32 1, %s847_s17   ;;  %s1162_s1 = sld [smem:[#allocation15_spill]] }
  0x1c   : > { %s1161_s4 = scalar_select %p952_p0, 1, 0 }
  0x1d   : > { %s186_s9 = scalar_lea.vmem [#allocation5], %s945_s29  ;;  %s968_s11 = scalar_lea.sflag [#allocation6], %s182_s5 }
  0x1e   : > { %s195_s10 = sshll.u32 %s186_s9, 4  ;;  %p974_p4 = pneg %p952_p0  ;;  %s965_s10 = int_to_ptr.vmem [resolvable:$true] %s195_s10 }
  0x21   : > { %s961_s8 = scalar_lea.hbm %s1162_s1, %s948_s30  ;;  %s676_s6 = scalar_lea.hbm %s1162_s1, 1024 }
  0x22   : > { %s671_s19 = scalar_lea.hbm %s961_s8, 512  ;;  %p677_p7 = scmp.lt.u32.totalorder %s961_s8, %s1162_s1 }
  0x23   : > { %p672_p3 = scmp.ne.s32.totalorder %s961_s8, %s671_s19  ;;  %p678_p10 = scmp.lt.u32.totalorder %s676_s6, %s671_s19 }
  0x24   : > { %p680_p12 = scmp.lt.u32.totalorder %s671_s19, %s961_s8 }
  0x25   : > { %p674_p5 = pnand %p974_p4, %p672_p3  ;;  %p679_p13 = por %p678_p10, %p677_p7 }
  0x27   : > { %p675_p6 = pneg %p674_p5  ;;  %p681_p1 = por %p680_p12, %p679_p13 }
  0x29   : > { %p682_p2 = pnand %p681_p1, %p675_p6 }
  0x2b   : > { %685 = shalt.err (!%p682_p2)
}
  0x2c   : > { %s686_s5 = scalar_lea.vmem %s965_s10, 512  ;;  %s849_s22 = smov [#allocation5]  }
  0x2d   : > { %p687_p3 = scmp.ne.s32.totalorder %s965_s10, %s686_s5  ;;  %s691_s23 = sshll.u32 %s849_s22, 4  ;;  %s692_s23 = int_to_ptr.vmem [resolvable:$false] %s691_s23 }
  0x2e   : > { %s693_s7 = scalar_lea.vmem %s692_s23, 1024  ;;  %p694_p9 = scmp.lt.s32.totalorder %s965_s10, %s692_s23 }
  0x2f   : > { %p689_p5 = pnand %p687_p3, %p974_p4  ;;  %p695_p8 = scmp.lt.s32.totalorder %s693_s7, %s686_s5 }
  0x31   : > { %p690_p11 = pneg %p689_p5  ;;  %p696_p7 = por %p695_p8, %p694_p9 }
  0x33   : > { %p697_p10 = pnand %p696_p7, %p690_p11 }
  0x35   : > { %700 = shalt.err (!%p697_p10)
}
  0x36   : > { %596 = dma.hbm_to_vmem [thread:$0]  (!%p952_p0), %s961_s8, 512, %s965_s10, %s968_s11  }
  0x37   : > { %p1164_p12 = scmp.lt.s32.totalorder %s847_s17, 3  ;;  %p1165_p1 = scmp.ge.s32.totalorder %s847_s17, 1 }
  0x38   : > { %s1010_s5 = scalar_lea.hbm %s1144_s0, %s948_s30  ;;  %s166_s22 = scalar_lea.vmem [#allocation2], %s945_s29 }
  0x39   : > { %p1002_p2 = pnand %p1165_p1, %p1164_p12  ;;  %s175_s23 = sshll.u32 %s166_s22, 4  ;;  %s1013_s23 = int_to_ptr.vmem [resolvable:$true] %s175_s23 }
  0x3a   : > { %s1019_s7 = scalar_lea.hbm %s1146_s2, %s948_s30  ;;  %s163_s1 = scalar_lea.sflag [#allocation3], %s162_s28 }
  0x3b   : > { %s1166_s19 = scalar_select %p1002_p2, 1, 0 }
  0x3c   : > { %s701_s20 = scalar_lea.hbm %s1010_s5, 512  ;;  %s706_s16 = scalar_lea.hbm %s1144_s0, 1024 }
  0x3d   : > { %p702_p8 = scmp.ne.s32.totalorder %s1010_s5, %s701_s20  ;;  %p707_p6 = scmp.lt.u32.totalorder %s1010_s5, %s1144_s0 }
  0x3e   : > { %p708_p13 = scmp.lt.u32.totalorder %s706_s16, %s701_s20  ;;  %p710_p5 = scmp.lt.u32.totalorder %s701_s20, %s1010_s5 }
  0x3f   : > { %p704_p9 = pnand %p702_p8, %p974_p4 }
  0x40   : > { %p709_p3 = por %p708_p13, %p707_p6 }
  0x41   : > { %p705_p11 = pneg %p704_p9 }
  0x42   : > { %p711_p7 = por %p710_p5, %p709_p3 }
  0x44   : > { %p712_p10 = pnand %p711_p7, %p705_p11 }
  0x46   : > { %715 = shalt.err (!%p712_p10)
}
  0x47   : > { %s716_s28 = scalar_lea.vmem %s1013_s23, 512  ;;  %s850_s30 = smov [#allocation2]  }
  0x48   : > { %p717_p12 = scmp.ne.s32.totalorder %s1013_s23, %s716_s28  ;;  %s721_s8 = sshll.u32 %s850_s30, 4  ;;  %s722_s8 = int_to_ptr.vmem [resolvable:$false] %s721_s8 }
  0x49   : > { %s723_s26 = scalar_lea.vmem %s722_s8, 1024  ;;  %p724_p9 = scmp.lt.s32.totalorder %s1013_s23, %s722_s8 }
  0x4a   : > { %p719_p1 = pnand %p717_p12, %p974_p4  ;;  %p725_p2 = scmp.lt.s32.totalorder %s723_s26, %s716_s28 }
  0x4c   : > { %p720_p8 = pneg %p719_p1  ;;  %p726_p6 = por %p725_p2, %p724_p9 }
  0x4e   : > { %p727_p13 = pnand %p726_p6, %p720_p8 }
  0x50   : > { %730 = shalt.err (!%p727_p13)
}
  0x51   : > { %593 = dma.hbm_to_vmem [thread:$0]  (!%p952_p0), %s1010_s5, 512, %s1013_s23, %s163_s1  }
  0x52   : > { %s206_s16 = scalar_lea.vmem [#allocation7], %s945_s29  ;;  %s731_s10 = scalar_lea.hbm %s1019_s7, 512 }
  0x53   : > { %s215_s20 = sshll.u32 %s206_s16, 4  ;;  %p732_p11 = scmp.ne.s32.totalorder %s1019_s7, %s731_s10  ;;  %s216_s20 = int_to_ptr.vmem [resolvable:$true] %s215_s20 }
  0x54   : > { %s736_s22 = scalar_lea.hbm %s1146_s2, 1024  ;;  %p737_p5 = scmp.lt.u32.totalorder %s1019_s7, %s1146_s2 }
  0x55   : > { %p734_p2 = pnand %p732_p11, %p974_p4  ;;  %p738_p7 = scmp.lt.u32.totalorder %s736_s22, %s731_s10 }
  0x56   : > { %p740_p12 = scmp.lt.u32.totalorder %s731_s10, %s1019_s7 }
  0x57   : > { %p735_p3 = pneg %p734_p2  ;;  %p739_p10 = por %p738_p7, %p737_p5 }
  0x59   : > { %p741_p1 = por %p740_p12, %p739_p10 }
  0x5b   : > { %p742_p8 = pnand %p741_p1, %p735_p3 }
  0x5d   : > { %745 = shalt.err (!%p742_p8)
}
  0x5e   : > { %s746_s1 = scalar_lea.vmem %s216_s20, 512  ;;  %s851_s29 = smov [#allocation7]  }
  0x5f   : > { %p747_p9 = scmp.ne.s32.totalorder %s216_s20, %s746_s1  ;;  %s751_s5 = sshll.u32 %s851_s29, 4  ;;  %s752_s5 = int_to_ptr.vmem [resolvable:$false] %s751_s5 }
  0x60   : > { %s753_s23 = scalar_lea.vmem %s752_s5, 1024  ;;  %p754_p11 = scmp.lt.s32.totalorder %s216_s20, %s752_s5 }
  0x61   : > { %p749_p6 = pnand %p747_p9, %p974_p4  ;;  %p755_p2 = scmp.lt.s32.totalorder %s753_s23, %s746_s1 }
  0x63   : > { %p750_p13 = pneg %p749_p6  ;;  %p756_p0 = por %p755_p2, %p754_p11 }
  0x65   : > { %p757_p5 = pnand %p756_p0, %p750_p13 }
  0x67   : > { %760 = shalt.err (!%p757_p5)
}
  0x68   : > { %p1167_p7 = scmp.ne.s32.totalorder %s1161_s4, 0  ;;  %p1168_p3 = scmp.ne.s32.totalorder %s1166_s19, 0 }
  0x69   : > { %s1066_s21 = sand.u32 (!%p1168_p3), 1, %s831_s13   ;;  %p1169_p0 = scmp.ne.s32.totalorder (!%p1168_p3), %s1157_s24, 0 }
  0x6a   : > { %599 = dma.hbm_to_vmem [thread:$0]  (!%p1167_p7), %s1019_s7, 512, %s216_s20, %s968_s11  }
  0x6b   : > { %224 = sbr.rel (%p1168_p3) target bundleno = 176 (0xb0), region = 32  ;;  %s1069_s8 = sshll.u32 (!%p1168_p3), %s1066_s21, 5 }
  0x6c   : > { %s227_s26 = scalar_lea.sflag (!%p1168_p3), [#allocation3], %s1066_s21  ;;  %s230_s16 = scalar_lea.vmem (!%p1168_p3), [#allocation2], %s1069_s8 }
  0x72   : > { %814 = dma.done.wait (%p1169_p0), %s227_s26, 512  }
  0x73   : > { %816 = vsyncadd (%p1169_p0), %s227_s26, 4294966784  ;;  %s235_s4 = sand.u32 1, %s905_s18   ;;  %s1079_s19 = scalar_lea.vmem [#allocation5], %s1069_s8 }
  0x74   : > { %s236_s11 = scalar_lea.sflag [#allocation6], %s235_s4 }
  0x75   : > { %818 = dma.done.wait (%p1169_p0), %s236_s11, 1024  }
  0x76   : > { %820 = vsyncadd (%p1169_p0), %s236_s11, 4294966272  ;;  %v284_v0 = vld [vmem:[%s230_s16] sm:$0xff]  ;;  %v285_v2 = vld [vmem:[%s230_s16 + $0x8] sm:$0xff]  ;;  %s248_s18 = scalar_lea.vmem [#allocation7], %s1069_s8  ;;  %v852_v24 = vmov 0.0   ;;  %s280_s24 = scalar_lea.vmem [#allocation8], %s1069_s8 }
  0x77   : > { %v561_v1 = vmul.f32 -1.442695, %v284_v0  ;;  %v562_v3 = vmul.f32 -1.442695, %v285_v2  ;;  %v286_v4 = vld [vmem:[%s230_s16 + $0x10] sm:$0xff]  ;;  %v287_v6 = vld [vmem:[%s230_s16 + $0x18] sm:$0xff] }
  0x78   : > { %v563_v5 = vmul.f32 -1.442695, %v286_v4  ;;  %v564_v7 = vmul.f32 -1.442695, %v287_v6  ;;  %v292_v16 = vld [vmem:[%s248_s18] sm:$0xff]  ;;  %v293_v17 = vld [vmem:[%s248_s18 + $0x8] sm:$0xff] }
  0x79   : > { %655 = vpow2.f32 %v561_v1  ;;  %vm328_vm0 = vcmp.eq.f32.partialorder %v292_v16, 1.0  ;;  %vm340_vm1 = vcmp.eq.f32.partialorder %v292_v16, 0.0  ;;  %vm329_vm2 = vcmp.eq.f32.partialorder %v293_v17, 1.0  ;;  %v294_v21 = vld [vmem:[%s248_s18 + $0x10] sm:$0xff]  ;;  %v288_v23 = vld [vmem:[%s1079_s19] sm:$0xff]  ;;  %v289_v27 = vld [vmem:[%s1079_s19 + $0x8] sm:$0xff] }
  0x7a   : > { %657 = vpow2.f32 %v562_v3  ;;  %v565_v25 = vsel %vm328_vm0, 1.0, %v852_v24  ;;  %v569_v26 = vsel %vm340_vm1, 1.0, %v852_v24  ;;  %vm341_vm3 = vcmp.eq.f32.partialorder %v293_v17, 0.0  ;;  %v295_v31 = vld [vmem:[%s248_s18 + $0x18] sm:$0xff]  ;;  %v290_v35 = vld [vmem:[%s1079_s19 + $0x10] sm:$0xff]  ;;  %s581_s7 = sshll.u32 %s839_s15, 9 }
  0x7b   : > { %659 = vpow2.f32 %v563_v5  ;;  %v566_v34 = vsel %vm329_vm2, 1.0, %v852_v24  ;;  %vm330_vm4 = vcmp.eq.f32.partialorder %v294_v21, 1.0  ;;  %vm342_vm5 = vcmp.eq.f32.partialorder %v294_v21, 0.0  ;;  %v291_v47 = vld [vmem:[%s1079_s19 + $0x18] sm:$0xff]  ;;  %s419_s20 = sshll.u32 %s280_s24, 4  ;;  %s1095_s9 = scalar_lea.hbm %s1147_s3, %s581_s7  ;;  %s1097_s20 = int_to_ptr.vmem [resolvable:$true] %s419_s20 }
  0x7c   : > { %661 = vpow2.f32 %v564_v7  ;;  %v570_v40 = vsel %vm341_vm3, 1.0, %v852_v24  ;;  %vm331_vm6 = vcmp.eq.f32.partialorder %v295_v31, 1.0  ;;  %v567_v44 = vsel %vm330_vm4, 1.0, %v852_v24  ;;  %s405_s22 = scalar_lea.sflag [#allocation4], %s1066_s21  ;;  %s761_s28 = scalar_lea.vmem %s1097_s20, 512 }
  0x7d   : > { %v571_v49 = vsel %vm342_vm5, 1.0, %v852_v24  ;;  %vm343_vm7 = vcmp.eq.f32.partialorder %v295_v31, 0.0  ;;  %v568_v54 = vsel %vm331_vm6, 1.0, %v852_v24  ;;  %p762_p4 = scmp.ne.s32.totalorder %s1097_s20, %s761_s28  ;;  %p1170_p10 = scmp.ne.s32.totalorder %s1158_s25, 0 }
  0x7e   : > { %v572_v62 = vsel %vm343_vm7, 1.0, %v852_v24  ;;  %s853_s15 = smov [#allocation8]  }
  0x7f   : > { %p763_p12 = pnand %p762_p4, %p1170_p10  ;;  %s765_s30 = sshll.u32 %s853_s15, 4  ;;  %s766_s30 = int_to_ptr.vmem [resolvable:$false] %s765_s30 }
  0x80   : > { %s767_s1 = scalar_lea.vmem %s766_s30, 1024  ;;  %p768_p8 = scmp.lt.s32.totalorder %s1097_s20, %s766_s30 }
  0x81   : > { %p764_p1 = pneg %p763_p12  ;;  %p769_p9 = scmp.lt.s32.totalorder %s767_s1, %s761_s28 }
  0x83   : > { %v656_v8 = vpop.eup %655  ;;  %p770_p6 = por %p769_p9, %p768_p8 }
  0x84   : > { %v658_v9 = vpop.eup %657  ;;  %v308_v10 = vadd.f32 1.0, %v656_v8 }
  0x85   : > { %v660_v11 = vpop.eup %659  ;;  %v309_v12 = vadd.f32 1.0, %v658_v9  ;;  %p771_p13 = pnand %p770_p6, %p764_p1 }
  0x86   : > { %663 = vrcp.f32 %v308_v10  ;;  %v310_v13 = vadd.f32 1.0, %v660_v11  ;;  %v662_v14 = vpop.eup %661 }
  0x87   : > { %665 = vrcp.f32 %v309_v12  ;;  %v311_v15 = vadd.f32 1.0, %v662_v14 }
  0x88   : > { %667 = vrcp.f32 %v310_v13 }
  0x89   : > { %669 = vrcp.f32 %v311_v15 }
  0x90   : > { %v664_v18 = vpop.eup %663 }
  0x91   : > { %v666_v19 = vpop.eup %665  ;;  %v320_v20 = vmax.f32 %v664_v18, 0.0001 }
  0x92   : > { %v668_v22 = vpop.eup %667  ;;  %v321_v28 = vmax.f32 %v666_v19, 0.0001 }
  0x93   : > { %v324_v29 = vmin.f32 %v320_v20, 0.9999  ;;  %v322_v30 = vmax.f32 %v668_v22, 0.0001  ;;  %v670_v32 = vpop.eup %669 }
  0x94   : > { %v325_v33 = vmin.f32 %v321_v28, 0.9999  ;;  %v323_v39 = vmax.f32 %v670_v32, 0.0001 }
  0x95   : > { %v352_v36 = vsub.f32 %v324_v29, %v288_v23  ;;  %v368_v37 = vmul.f32 %v324_v29, %v324_v29  ;;  %v326_v38 = vmin.f32 %v322_v30, 0.9999 }
  0x96   : > { %v353_v41 = vsub.f32 %v325_v33, %v289_v27  ;;  %v369_v42 = vmul.f32 %v325_v33, %v325_v33  ;;  %v327_v50 = vmin.f32 %v323_v39, 0.9999 }
  0x97   : > { %v356_v43 = vmul.f32 %v352_v36, %v352_v36  ;;  %v354_v45 = vsub.f32 %v326_v38, %v290_v35  ;;  %v370_v46 = vmul.f32 %v326_v38, %v326_v38  ;;  %v372_v52 = vmul.f32 %v569_v26, %v368_v37 }
  0x98   : > { %v357_v48 = vmul.f32 %v353_v41, %v353_v41  ;;  %v373_v56 = vmul.f32 %v570_v40, %v369_v42  ;;  %v355_v57 = vsub.f32 %v327_v50, %v291_v47  ;;  %v371_v58 = vmul.f32 %v327_v50, %v327_v50 }
  0x99   : > { %v360_v51 = vmul.f32 %v565_v25, %v356_v43  ;;  %v358_v53 = vmul.f32 %v354_v45, %v354_v45  ;;  %v374_v61 = vmul.f32 %v571_v49, %v370_v46 }
  0x9a   : > { %v361_v55 = vmul.f32 %v566_v34, %v357_v48  ;;  %v359_v0 = vmul.f32 %v355_v57, %v355_v57  ;;  %v375_v5 = vmul.f32 %v572_v62, %v371_v58 }
  0x9b   : > { %v364_v59 = vmul.f32 5.0, %v360_v51  ;;  %v362_v60 = vmul.f32 %v567_v44, %v358_v53 }
  0x9c   : > { %v365_v63 = vmul.f32 5.0, %v361_v55  ;;  %v363_v4 = vmul.f32 %v568_v54, %v359_v0 }
  0x9d   : > { %v376_v1 = vadd.f32 %v372_v52, %v364_v59  ;;  %v366_v2 = vmul.f32 5.0, %v362_v60 }
  0x9e   : > { %v377_v3 = vadd.f32 %v373_v56, %v365_v63  ;;  %v367_v7 = vmul.f32 5.0, %v363_v4 }
  0x9f   : > { %v378_v6 = vadd.f32 %v374_v61, %v366_v2  ;;  %400 = vst [vmem:[%s280_s24] sm:$0xff] %v376_v1 }
  0xa0   : > { %401 = vst [vmem:[%s280_s24 + $0x8] sm:$0xff] %v377_v3  ;;  %v379_v8 = vadd.f32 %v375_v5, %v367_v7 }
  0xa1   : > { %402 = vst [vmem:[%s280_s24 + $0x10] sm:$0xff] %v378_v6 }
  0xa2   : > { %403 = vst [vmem:[%s280_s24 + $0x18] sm:$0xff] %v379_v8 }
  0xa3   : > { %774 = shalt.err (!%p771_p13)
}
  0xa4   : > { %s775_s29 = scalar_lea.hbm %s1095_s9, 512  ;;  %s779_s21 = scalar_lea.hbm %s1147_s3, 1024 }
  0xa5   : > { %p776_p11 = scmp.ne.s32.totalorder %s1095_s9, %s775_s29  ;;  %p780_p7 = scmp.lt.u32.totalorder %s1095_s9, %s1147_s3 }
  0xa6   : > { %p781_p3 = scmp.lt.u32.totalorder %s779_s21, %s775_s29  ;;  %p783_p4 = scmp.lt.u32.totalorder %s775_s29, %s1095_s9 }
  0xa7   : > { %p777_p2 = pnand %p776_p11, %p1170_p10 }
  0xa8   : > { %p782_p0 = por %p781_p3, %p780_p7 }
  0xa9   : > { %p778_p5 = pneg %p777_p2 }
  0xaa   : > { %p784_p12 = por %p783_p4, %p782_p0 }
  0xac   : > { %p785_p1 = pnand %p784_p12, %p778_p5 }
  0xae   : > { %788 = shalt.err (!%p785_p1)
}
  0xaf   : > { %588 = dma.vmem_to_hbm [thread:$0]  (%p1170_p10), %s1097_s20, 512, %s1095_s9, %s405_s22  }
  0xb0 PF: > { %s431_s16 = sand.u32 1, %s827_s12   ;;  %p1171_p8 = scmp.ne.s32.totalorder %s1160_s27, 0 }
  0xb1   : > { %p1172_p9 = scmp.ge.s32.totalorder %s847_s17, 2  ;;  %s432_s4 = scalar_lea.sflag [#allocation4], %s431_s16 }
  0xb3   : > { %p601_p6 = pnand %p1172_p9, %p1171_p8 }
  0xb5   : > { %822 = dma.done.wait (!%p601_p6), %s432_s4, 512  }
  0xb6   : > { %824 = vsyncadd (!%p601_p6), %s432_s4, 4294966784  ;;  %s22_s17 = sadd.s32 1, %s847_s17   ;;  %s1173_s25 = sld [smem:[#allocation14_spill]] }
  0xb7   : > { %p19_p13 = scmp.ge.s32.totalorder %s22_s17, 4   ;;  %s1174_s15 = sld [smem:[#allocation12_spill]] }
  0xb8   : > { %s1175_s16 = sld [smem:[#allocation13_spill]]  ;;  %s1176_s12 = smov %s831_s13 }
  0xb9   : > { %s1177_s13 = smov %s835_s14  ;;  %21 = sbr.rel (!%p19_p13) target bundleno = 10 (0xa), region = 105 }
  0xbc   : > { %s1178_s14 = smov %s1173_s25 }
  0xc0   :  { %437 = vsyncpa [#allocation3], 1 }
  0xc1   :  { %439 = vsyncpa [#allocation3 + $0x1], 1 }
  0xc2   :  { %440 = vsyncpa [#allocation6], 1 }
  0xc3   :  { %442 = vsyncpa [#allocation6 + $0x1], 1 }
  0xc4   :  { %443 = vsyncpa [#allocation4], 1 }
  0xc5   :  { %445 = vsyncpa [#allocation4 + $0x1], 1 }

</bundles_post_ra>
